<compile_context>
chip_gen: v7x
topology: tpu7x:2x2x1
jax: 0.10.0
libtpu: 0.0.40
codegen_flags: <defaults>
</compile_context>

<pallas_src>
from functools import partial

import jax
import jax.numpy as jnp
from jax.experimental import pallas as pl
from jax.experimental.pallas import tpu as pltpu

_LANE = 128          # vreg lane width: pad hidden dim to this
_HIDDEN = 64         # fixed by the module
_SUBLANE_PACK = 16   # bf16 sublane packing granularity


def _round_up(x, m):
    return (x + m - 1) // m * m


# --------------------------------------------------------------------------
# Kernel
# --------------------------------------------------------------------------
def _mlp_kernel(x_ref, w1_ref, b1_ref, w2_ref, b2_ref, o_ref):
    # Cast x to the MXU dtype in-register (x streamed as f32 from HBM).
    x = x_ref[...].astype(w1_ref.dtype)
    # hidden = tanh(x @ W1 + b1): MXU accumulates in f32; bias add + tanh f32.
    h = jnp.dot(x, w1_ref[...], preferred_element_type=jnp.float32)
    h = jnp.tanh(h + b1_ref[...])
    # q = hidden @ W2 + b2  (output block is only n_actions lanes wide).
    q = jnp.dot(h.astype(w2_ref.dtype), w2_ref[...],
                preferred_element_type=jnp.float32)
    o_ref[...] = (q + b2_ref[...]).astype(o_ref.dtype)


# --------------------------------------------------------------------------
# One-time parameter preparation (hoisted out of the forward hot path)
# --------------------------------------------------------------------------
def prepare_params(w1, b1, w2, b2, *, matmul_dtype=jnp.bfloat16):
    """Pad hidden dim 64->128 (math no-op) and cast weights to the MXU dtype.

    w1: (in_features, hidden), b1: (hidden,) or (1, hidden)
    w2: (hidden, n_actions),   b2: (n_actions,) or (1, n_actions)
    """
    in_features, hidden = w1.shape
    n_actions = w2.shape[1]
    hp = _round_up(hidden, _LANE)  # 64 -> 128: full lane occupancy

    w1p = jnp.zeros((in_features, hp), jnp.float32).at[:, :hidden].set(w1)
    b1p = jnp.zeros((1, hp), jnp.float32).at[:, :hidden].set(
        jnp.reshape(b1, (1, hidden)))
    w2p = jnp.zeros((hp, n_actions), jnp.float32).at[:hidden, :].set(w2)
    b2p = jnp.reshape(b2, (1, n_actions)).astype(jnp.float32)

    # bf16 MXU inputs (all generations); biases / accumulation stay f32.
    return (w1p.astype(matmul_dtype), b1p, w2p.astype(matmul_dtype), b2p)


def _default_block_batch(batch):
    """Tile heuristic: amortize per-step overhead; >=2 steps on v7x (2 TCs)."""
    b16 = _round_up(max(batch, _SUBLANE_PACK), _SUBLANE_PACK)
    try:
        kind = jax.devices()[0].device_kind.lower()
    except Exception:
        kind = ""
    two_tc = ("v7" in kind) or ("7x" in kind)
    cap = 2048  # <2 MiB double-buffered even with the f32 x tile
    if two_tc and b16 > _SUBLANE_PACK:
        tb = _round_up(pl.cdiv(b16, 2), _SUBLANE_PACK)  # balance the 2 TCs
        return min(tb, cap)
    return min(b16, cap)


# --------------------------------------------------------------------------
# Forward pass
# --------------------------------------------------------------------------
@partial(jax.jit, static_argnames=("block_batch",))
def network_forward(x, w1p, b1p, w2p, b2p, block_batch=None):
    """Fused Linear(in,64) -> Tanh -> Linear(64,n_actions).

    x   : (B, in_features) float32
    w1p : (in_features, 128) matmul dtype, b1p: (1, 128) f32
    w2p : (128, n_actions)  matmul dtype, b2p: (1, n_actions) f32
    returns q_values: (B, n_actions) float32
    """
    B, in_features = x.shape
    hp = w1p.shape[1]
    n_actions = w2p.shape[1]

    if block_batch is None:
        tb = _default_block_batch(B)
    else:
        tb = _round_up(max(int(block_batch), _SUBLANE_PACK), _SUBLANE_PACK)

    b_pad = _round_up(B, tb)
    if b_pad != B:
        x = jnp.pad(x, ((0, b_pad - B), (0, 0)))  # fuses under jit

    out = pl.pallas_call(
        _mlp_kernel,
        out_shape=jax.ShapeDtypeStruct((b_pad, n_actions), jnp.float32),
        grid=(b_pad // tb,),
        in_specs=[
            pl.BlockSpec((tb, in_features), lambda i: (i, 0)),   # x: streamed f32
            pl.BlockSpec((in_features, hp), lambda i: (0, 0)),   # W1: resident
            pl.BlockSpec((1, hp), lambda i: (0, 0)),             # b1: resident
            pl.BlockSpec((hp, n_actions), lambda i: (0, 0)),     # W2: resident
            pl.BlockSpec((1, n_actions), lambda i: (0, 0)),      # b2: resident
        ],
        out_specs=pl.BlockSpec((tb, n_actions), lambda i: (i, 0)),
        compiler_params=pltpu.CompilerParams(
            dimension_semantics=("parallel",)),
    )(x, w1p, b1p, w2p, b2p)

    return out[:B, :]


# --------------------------------------------------------------------------
# Init mimicking PyTorch Linear default U(-1/sqrt(fan_in), 1/sqrt(fan_in))
# --------------------------------------------------------------------------
def init_params(key, in_features, hidden, n_actions):
    k1, k2, k3, k4 = jax.random.split(key, 4)
    lim1 = 1.0 / jnp.sqrt(jnp.float32(in_features))
    lim2 = 1.0 / jnp.sqrt(jnp.float32(hidden))
    w1 = jax.random.uniform(k1, (in_features, hidden), jnp.float32, -lim1, lim1)
    b1 = jax.random.uniform(k2, (1, hidden), jnp.float32, -lim1, lim1)
    w2 = jax.random.uniform(k3, (hidden, n_actions), jnp.float32, -lim2, lim2)
    b2 = jax.random.uniform(k4, (1, n_actions), jnp.float32, -lim2, lim2)
    return w1, b1, w2, b2


if __name__ == "__main__":
    # Small shapes consistent with the module: flattened observation vector,
    # hidden=64 (fixed), a handful of discrete actions.
    # NOTE: for an act()-style loop at B=1-2, batch several env observations
    # per call -- per-launch overhead dominates any in-kernel tuning there.
    batch = 2
    in_features = 8    # int(np.prod(env.observation_space.shape))
    hidden = _HIDDEN
    n_actions = 4      # env.action_space.n

    key = jax.random.PRNGKey(0)
    kx, kp = jax.random.split(key)
    x = jax.random.normal(kx, (batch, in_features), jnp.float32)
    w1, b1, w2, b2 = init_params(kp, in_features, hidden, n_actions)

    # One-time parameter prep (padding + bf16 cast) -- NOT in the hot path.
    params = prepare_params(w1, b1, w2, b2, matmul_dtype=jnp.bfloat16)
    params = jax.tree_util.tree_map(jax.block_until_ready, params)

    q_values = network_forward(x, *params)
    q_values = jax.block_until_ready(q_values)

    # Reference check in plain JAX f32 (same math as the PyTorch forward).
    ref = jnp.tanh(x @ w1 + b1) @ w2 + b2
    assert q_values.shape == (batch, n_actions)
    err = float(jnp.max(jnp.abs(q_values - ref)))
    assert jnp.allclose(q_values, ref, atol=5e-2, rtol=5e-2), err

    # `act` equivalent (argmax over q-values) -- plain JAX glue, not the hot path.
    _action = int(jnp.argmax(q_values[0]))

    print("KERNEL_OK")
</pallas_src>

<mosaic_0001>
module attributes {stable_mosaic.version = 11 : i64} {
  func.func @_mlp_kernel(%arg0: i32, %arg1: memref<16x8xf32, #tpu.memory_space<vmem>>, %arg2: memref<8x128xbf16, #tpu.memory_space<vmem>>, %arg3: memref<1x128xf32, #tpu.memory_space<vmem>>, %arg4: memref<128x4xbf16, #tpu.memory_space<vmem>>, %arg5: memref<1x4xf32, #tpu.memory_space<vmem>>, %arg6: memref<16x4xf32, #tpu.memory_space<vmem>>) attributes {dimension_semantics = [#tpu.dimension_semantics<parallel>], iteration_bounds = array<i64: 1>, scalar_prefetch = 0 : i64, scratch_operands = 0 : i64, tpu.core_type = #tpu.core_type<tc>, window_params = [{transform_indices = @transform_0, window_bounds = array<i64: 16, 8>}, {pipeline_mode = #tpu.pipeline_mode<synchronous>, transform_indices = @transform_1, window_bounds = array<i64: 8, 128>}, {pipeline_mode = #tpu.pipeline_mode<synchronous>, transform_indices = @transform_2, window_bounds = array<i64: 1, 128>}, {pipeline_mode = #tpu.pipeline_mode<synchronous>, transform_indices = @transform_3, window_bounds = array<i64: 128, 4>}, {pipeline_mode = #tpu.pipeline_mode<synchronous>, transform_indices = @transform_4, window_bounds = array<i64: 1, 4>}, {transform_indices = @transform_5, window_bounds = array<i64: 16, 4>}]} {
    %c0 = arith.constant 0 : index
    %c0_0 = arith.constant 0 : index
    %0 = vector.load %arg1[%c0, %c0_0] : memref<16x8xf32, #tpu.memory_space<vmem>>, vector<16x8xf32>
    %1 = arith.truncf %0 : vector<16x8xf32> to vector<16x8xbf16>
    %c0_1 = arith.constant 0 : index
    %c0_2 = arith.constant 0 : index
    %2 = vector.load %arg2[%c0_1, %c0_2] : memref<8x128xbf16, #tpu.memory_space<vmem>>, vector<8x128xbf16>
    %cst = arith.constant dense<0.000000e+00> : vector<16x128xf32>
    %3 = tpu.matmul %1, %2, %cst {dimension_numbers = #tpu.dot_dimension_numbers<[1], [0], [0], [1], [0, 0, 1, 1], [], []>} : vector<16x8xbf16>, vector<8x128xbf16>, vector<16x128xf32> -> vector<16x128xf32>
    %c0_3 = arith.constant 0 : index
    %c0_4 = arith.constant 0 : index
    %4 = vector.load %arg3[%c0_3, %c0_4] : memref<1x128xf32, #tpu.memory_space<vmem>>, vector<1x128xf32>
    %5 = vector.broadcast %4 : vector<1x128xf32> to vector<16x128xf32>
    %6 = arith.addf %3, %5 : vector<16x128xf32>
    %7 = math.tanh %6 : vector<16x128xf32>
    %8 = arith.truncf %7 : vector<16x128xf32> to vector<16x128xbf16>
    %c0_5 = arith.constant 0 : index
    %c0_6 = arith.constant 0 : index
    %9 = vector.load %arg4[%c0_5, %c0_6] : memref<128x4xbf16, #tpu.memory_space<vmem>>, vector<128x4xbf16>
    %cst_7 = arith.constant dense<0.000000e+00> : vector<16x4xf32>
    %10 = tpu.matmul %8, %9, %cst_7 {dimension_numbers = #tpu.dot_dimension_numbers<[1], [0], [0], [1], [0, 0, 1, 1], [], []>} : vector<16x128xbf16>, vector<128x4xbf16>, vector<16x4xf32> -> vector<16x4xf32>
    %c0_8 = arith.constant 0 : index
    %c0_9 = arith.constant 0 : index
    %11 = vector.load %arg5[%c0_8, %c0_9] : memref<1x4xf32, #tpu.memory_space<vmem>>, vector<1x4xf32>
    %12 = vector.broadcast %11 : vector<1x4xf32> to vector<16x4xf32>
    %13 = arith.addf %10, %12 : vector<16x4xf32>
    %c0_10 = arith.constant 0 : index
    %c0_11 = arith.constant 0 : index
    %14 = vector.load %arg6[%c0_10, %c0_11] : memref<16x4xf32, #tpu.memory_space<vmem>>, vector<16x4xf32>
    tpu.vector_store %arg6[%c0_10, %c0_11], %13 {strides = array<i32>} : memref<16x4xf32, #tpu.memory_space<vmem>>, vector<16x4xf32>,
    return
  }
  func.func @transform_0(%arg0: i32) -> (i32, i32) {
    %c0_i32 = arith.constant 0 : i32
    %c0_i32_0 = arith.constant 0 : i32
    return %arg0, %c0_i32 : i32, i32
  }
  func.func @transform_1(%arg0: i32) -> (i32, i32) {
    %c0_i32 = arith.constant 0 : i32
    %c0_i32_0 = arith.constant 0 : i32
    %c0_i32_1 = arith.constant 0 : i32
    return %c0_i32, %c0_i32_0 : i32, i32
  }
  func.func @transform_2(%arg0: i32) -> (i32, i32) {
    %c0_i32 = arith.constant 0 : i32
    %c0_i32_0 = arith.constant 0 : i32
    %c0_i32_1 = arith.constant 0 : i32
    return %c0_i32, %c0_i32_0 : i32, i32
  }
  func.func @transform_3(%arg0: i32) -> (i32, i32) {
    %c0_i32 = arith.constant 0 : i32
    %c0_i32_0 = arith.constant 0 : i32
    %c0_i32_1 = arith.constant 0 : i32
    return %c0_i32, %c0_i32_0 : i32, i32
  }
  func.func @transform_4(%arg0: i32) -> (i32, i32) {
    %c0_i32 = arith.constant 0 : i32
    %c0_i32_0 = arith.constant 0 : i32
    %c0_i32_1 = arith.constant 0 : i32
    return %c0_i32, %c0_i32_0 : i32, i32
  }
  func.func @transform_5(%arg0: i32) -> (i32, i32) {
    %c0_i32 = arith.constant 0 : i32
    %c0_i32_0 = arith.constant 0 : i32
    return %arg0, %c0_i32 : i32, i32
  }
}

</mosaic_0001>

<bundles_post_ra>
// kernel: network_forward.1
= control target key start
LH: loop header
LB: loop body
LE: loop exit
PB: predicated region body
PF: predicated region fallthrough
CT: control target
= control target key end

     0   :  { %vm36_vm0 = vcmask 1043456   ;;  %v265_v0 = vmov 0.0   ;;  %vm266_vm1 = vmmov 0   ;;  %vm32_vm2 = vcmask 64512   ;;  %s342_s1 = inlined_call_operand.vmem [shape: bf16[8,128], index: 1, kind: input, shape index: {}]   ;;  %s343_s0 = inlined_call_operand.vmem [shape: f32[16,8], index: 0, kind: input, shape index: {}]   ;;  %s344_s3 = inlined_call_operand.vmem [shape: bf16[128,4], index: 3, kind: input, shape index: {}]   ;;  %s345_s2 = inlined_call_operand.vmem [shape: f32[1,128], index: 2, kind: input, shape index: {}]   ;;  %s346_s4 = inlined_call_operand.vmem [shape: f32[1,4], index: 4, kind: input, shape index: {}]   ;;  %s347_s5 = inlined_call_operand.vmem [shape: f32[16,4], index: 5, kind: output, shape index: {}]  }
   0x1   :  { %225 = vmatprep.subr.bf16.mxu0 %v265_v0  ;;  %v24_v1 = vld [vmem:[%s342_s1] sm:$0xf]  ;;  %227 = vmatprep.mubr.msk.bf16.mxu0 %vm266_vm1, %v265_v0  ;;  %v22_v3 = vld [vmem:[%s343_s0 + $0x8] sm:$0xff]  ;;  %v255_v8 = vld [vmem:[%s344_s3 + $0x10] sm:$0xff]   ;;  %vm196_vm3 = vcmask 31744  }
   0x2   :  { %v21_v2 = vld [vmem:[%s343_s0] sm:$0xff]  ;;  %v38_v4 = vsel %vm36_vm0, %v24_v1, 0  ;;  %231 = vmatprep.subr.bf16.mxu1 %v265_v0  ;;  %247 = vmatprep.mubr.msk.bf16.mxu1 %vm266_vm1, %v265_v0  ;;  %v254_v7 = vld [vmem:[%s344_s3 + $0x8] sm:$0xff]   ;;  %v256_v9 = vld [vmem:[%s344_s3 + $0x18] sm:$0xff]  }
   0x3   :  { %v23_v5 = vpack.c.bf16 %v22_v3, %v21_v2  ;;  %v253_v6 = vld [vmem:[%s344_s3] sm:$0xff]   ;;  %226 = vmatpush3.bf16.msra.mxu0 %v38_v4  ;;  %v258_v11 = vld [vmem:[%s344_s3 + $0x28] sm:$0xff]   ;;  %v259_v12 = vld [vmem:[%s344_s3 + $0x30] sm:$0xff]  }
   0x4   :  { %232 = vmatpush3.bf16.msra.mxu1 %v253_v6  ;;  %v257_v10 = vld [vmem:[%s344_s3 + $0x20] sm:$0xff]   ;;  %v260_v13 = vld [vmem:[%s344_s3 + $0x38] sm:$0xff]  }
   0x5   :  { %233 = vmatprep.subr.bf16.mxu1 %v265_v0  ;;  %v203_v14 = vld [vmem:[%s345_s2] ss:$0 sm:$0xff] }
   0x6   :  { %228 = vmatmul.mubr.msk.bf16.vlgmr.msra.gmra.mrb[0].mxu0 %vm32_vm2, %v23_v5  ;;  %v205_v24 = vld [vmem:[%s346_s4] ss:$0 sm:$0xff] }
   0x8   :  { %234 = vmatpush3.bf16.msra.mxu1 %v254_v7 }
   0x9   :  { %235 = vmatprep.subr.bf16.mxu1 %v265_v0 }
   0xc   :  { %236 = vmatpush3.bf16.msra.mxu1 %v255_v8 }
   0xd   :  { %237 = vmatprep.subr.bf16.mxu1 %v265_v0 }
  0x10   :  { %238 = vmatpush3.bf16.msra.mxu1 %v256_v9 }
  0x11   :  { %239 = vmatprep.subr.bf16.mxu1 %v265_v0 }
  0x14   :  { %240 = vmatpush3.bf16.msra.mxu1 %v257_v10 }
  0x15   :  { %241 = vmatprep.subr.bf16.mxu1 %v265_v0 }
  0x18   :  { %242 = vmatpush3.bf16.msra.mxu1 %v258_v11 }
  0x19   :  { %243 = vmatprep.subr.bf16.mxu1 %v265_v0 }
  0x1c   :  { %244 = vmatpush3.bf16.msra.mxu1 %v259_v12 }
  0x1d   :  { %245 = vmatprep.subr.bf16.mxu1 %v265_v0 }
  0x20   :  { %246 = vmatpush3.bf16.msra.mxu1 %v260_v13 }
  0xd9   :  { %v74_v15 = vpop.f32.mrb[0].mxu0 }
  0xda   :  { %v75_v16 = vadd.f32 %v203_v14, %v74_v15  ;;  %v229_v17 = vpop.f32.mrb[1].mxu0 }
  0xdb   :  { %v77_v18 = vpop.f32.mrb[2].mxu0 }
  0xdc   :  { %v78_v19 = vadd.f32 %v203_v14, %v77_v18  ;;  %v230_v20 = vpop.f32.mrb[3].mxu0  ;;  %261 = vtanh.f32 %v75_v16 }
  0xde   :  { %263 = vtanh.f32 %v78_v19 }
  0xe6   :  { %v262_v21 = vpop.eup %261 }
  0xe8   :  { %v264_v22 = vpop.eup %263 }
  0xe9   :  { %v83_v23 = vpack.c.bf16 %v264_v22, %v262_v21 }
  0xeb   :  { %248 = vmatmul.mubr.bf16.vlgmr.msra.gmra.mrb[0].mxu1 %v83_v23 }
 0x1be   :  { %v189_v25 = vpop.f32.mrb[0].mxu1 }
 0x1bf   :  { %v190_v26 = vadd.f32 %v205_v24, %v189_v25  ;;  %v249_v27 = vpop.f32.mrb[1].mxu1 }
 0x1c0   :  { %v192_v28 = vpop.f32.mrb[2].mxu1 }
 0x1c1   :  { %197 = vst.msk [vmem:[%s347_s5] sm:$0xff] %vm196_vm3, %v190_v26  ;;  %v193_v29 = vadd.f32 %v205_v24, %v192_v28  ;;  %v250_v30 = vpop.f32.mrb[3].mxu1 }
 0x1c3   :  { %198 = vst.msk [vmem:[%s347_s5 + $0x8] sm:$0xff] %vm196_vm3, %v193_v29 }

</bundles_post_ra>
